<compile_context>
chip_gen: v6e
topology: v6e:2x2x1
jax: 0.10.0
libtpu: 0.0.40
codegen_flags: <defaults>
</compile_context>

<pallas_src>
import functools

import jax
import jax.numpy as jnp
from jax import lax
from jax.experimental import pallas as pl
from jax.experimental.pallas import tpu as pltpu


# ----------------------------------------------------------------------------
# Kernel: conv (one banded matmul) + bias + ReLU + per-image channel stats.
# B images per grid step; every output block is unique per step ("parallel").
# ----------------------------------------------------------------------------
def conv_relu_stats_kernel(x_ref, w_ref, b_ref, y_ref, stats_ref, *, kh_taps):
    """Per-step block shapes:
      x_ref:     (B, Hp, WpCp)        padded input images, lanes = Wp*Cin (128-padded)
      w_ref:     (KH*WpCp, OWCp)      banded weight, constant index -> resident
      b_ref:     (1, OWCp)            bias tiled along the output lanes
      y_ref:     (B, OH, OWCp)        conv + bias + ReLU (lane-dense stores)
      stats_ref: (B, 2, OWCp)         per-image [sum over OH; sum of squares over OH]
    """
    bsz = x_ref.shape[0]
    wpcp = x_ref.shape[2]
    oh = y_ref.shape[1]
    owcp = y_ref.shape[2]

    # Build the shifted-row LHS once per block: row (b*OH + oh) holds the
    # concatenation over kh of x[b, oh + kh, :].  One MXU matmul total.
    parts = [
        x_ref[:, kh:kh + oh, :].reshape(bsz * oh, wpcp)   # (B*OH, WpCp)
        for kh in range(kh_taps)                          # static unroll, KH small
    ]
    lhs = jnp.concatenate(parts, axis=-1)                 # (B*OH, KH*WpCp)

    acc = jnp.dot(lhs, w_ref[...], preferred_element_type=jnp.float32)  # (B*OH, OWCp)
    y = jnp.maximum(acc + b_ref[...], 0.0)                # bias + ReLU in f32
    y3 = y.reshape(bsz, oh, owcp)

    y_ref[...] = y3.astype(y_ref.dtype)
    # per-image partial statistics (reduced over batch / ow groups in the wrapper)
    stats_ref[:, 0:1, :] = jnp.sum(y3, axis=1, keepdims=True)
    stats_ref[:, 1:2, :] = jnp.sum(y3 * y3, axis=1, keepdims=True)


# ----------------------------------------------------------------------------
# Wrapper
# ----------------------------------------------------------------------------
def conv_act_batchnorm(x_nchw, weight_oihw, bias, gamma, beta, *, padding=0,
                       eps=1e-5, mxu_dtype=jnp.float32):
    """Conv2d(stride=1, padding) -> ReLU -> BatchNorm2d (training-mode batch stats).

    mxu_dtype=jnp.bfloat16 is recommended on v6e/v7x when ~1e-2 output tolerance
    is acceptable; accumulation / bias / ReLU / statistics stay f32 either way.
    """
    N, Cin, H, W = x_nchw.shape
    Cout, _, KH, KW = weight_oihw.shape
    Hp, Wp = H + 2 * padding, W + 2 * padding
    OH, OW = Hp - KH + 1, Wp - KW + 1
    WpC, OWC = Wp * Cin, OW * Cout
    LANES = 128
    WpCp = ((WpC + LANES - 1) // LANES) * LANES
    OWCp = ((OWC + LANES - 1) // LANES) * LANES

    # Images per grid step: fatten M (= B*OH) toward ~256 rows.
    B = max(1, min(N, 256 // max(OH, 1)))
    G = -(-N // B)                      # ceil(N / B)
    N_pad = G * B                       # zero-padded images are sliced away below

    # ---- glue (tiny, XLA): padded NHWC view with W and Cin fused on the lane axis
    x_nhwc = jnp.transpose(x_nchw, (0, 2, 3, 1)).astype(jnp.float32)
    xp = jnp.pad(x_nhwc, ((0, N_pad - N), (padding, padding),
                          (padding, padding), (0, 0)))
    xp = xp.reshape(N_pad, Hp, WpC)
    if WpCp != WpC:
        xp = jnp.pad(xp, ((0, 0), (0, 0), (0, WpCp - WpC)))
    xp = xp.astype(mxu_dtype)

    # ---- banded ("Toeplitz") weight without a dense one-hot einsum:
    #   A[kh, ow, w, ci, co] = weight[co, ci, kh, w-ow] if 0 <= w-ow < KW else 0
    # built with the pad / flatten / truncate / reshape row-shift trick.
    w_t = jnp.transpose(weight_oihw, (2, 3, 1, 0)).astype(jnp.float32)  # (KH,KW,Cin,Cout)
    P = jnp.broadcast_to(w_t[:, None], (KH, OW, KW, Cin, Cout))
    P = jnp.pad(P, ((0, 0), (0, 0), (0, Wp + 1 - KW), (0, 0), (0, 0)))
    A = P.reshape(KH, OW * (Wp + 1), Cin, Cout)[:, :OW * Wp]
    A = A.reshape(KH, OW, Wp, Cin, Cout)
    wband = jnp.transpose(A, (0, 2, 3, 1, 4)).reshape(KH, WpC, OWC)
    wband = jnp.pad(wband, ((0, 0), (0, WpCp - WpC), (0, OWCp - OWC)))
    wflat = wband.reshape(KH * WpCp, OWCp).astype(mxu_dtype)

    brow = jnp.tile(bias.astype(jnp.float32), OW)                        # (OWC,)
    brow = jnp.pad(brow, (0, OWCp - OWC)).reshape(1, OWCp)

    kernel = functools.partial(conv_relu_stats_kernel, kh_taps=KH)

    y, stats = pl.pallas_call(
        kernel,
        out_shape=(
            jax.ShapeDtypeStruct((N_pad, OH, OWCp), jnp.float32),
            jax.ShapeDtypeStruct((N_pad, 2, OWCp), jnp.float32),
        ),
        grid_spec=pltpu.PrefetchScalarGridSpec(
            num_scalar_prefetch=0,
            grid=(G,),
            in_specs=[
                pl.BlockSpec((B, Hp, WpCp), lambda g: (g, 0, 0)),
                pl.BlockSpec((KH * WpCp, OWCp), lambda g: (0, 0)),
                pl.BlockSpec((1, OWCp), lambda g: (0, 0)),
            ],
            out_specs=(
                pl.BlockSpec((B, OH, OWCp), lambda g: (g, 0, 0)),
                pl.BlockSpec((B, 2, OWCp), lambda g: (g, 0, 0)),
            ),
        ),
        compiler_params=pltpu.CompilerParams(dimension_semantics=("parallel",)),
    )(xp, wflat, brow)

    # ---- BatchNorm training-mode batch statistics (biased variance); tiny scalars.
    # TODO(synk): single-pass E[y^2]-E[y]^2 is cancellation-prone if activations
    #             become large/offset; switch to a two-pass variance in that regime.
    m = N * OH * OW
    stats_v = stats[:N, :, :OWC].reshape(N, 2, OW, Cout)
    csum = stats_v[:, 0].sum(axis=(0, 1))
    cssq = stats_v[:, 1].sum(axis=(0, 1))
    mean = csum / m
    var = cssq / m - mean * mean
    inv = lax.rsqrt(var + eps)
    scale = gamma.astype(jnp.float32) * inv
    shift = beta.astype(jnp.float32) - mean * scale

    # ---- BN affine on the lane-dense layout, then NHWC -> NCHW (fused by XLA).
    # TODO(synk): the NCHW store is inherently lane-sparse for small W; a Pallas
    #             transpose pass storing (N, Cout, OH*OW) would make it lane-dense.
    scale_row = jnp.tile(scale, OW)
    shift_row = jnp.tile(shift, OW)
    y_act = y[:N, :, :OWC] * scale_row + shift_row                       # lane-dense
    out = jnp.transpose(y_act.reshape(N, OH, OW, Cout), (0, 3, 1, 2))
    return out


# ----------------------------------------------------------------------------
# Pure-JAX reference (same semantics as the PyTorch module in training mode)
# ----------------------------------------------------------------------------
def reference(x_nchw, weight_oihw, bias, gamma, beta, *, padding=0, eps=1e-5):
    y = lax.conv_general_dilated(
        x_nchw.astype(jnp.float32), weight_oihw.astype(jnp.float32),
        window_strides=(1, 1), padding=[(padding, padding), (padding, padding)],
        dimension_numbers=("NCHW", "OIHW", "NCHW"))
    y = y + bias.reshape(1, -1, 1, 1)
    y = jnp.maximum(y, 0.0)
    mean = jnp.mean(y, axis=(0, 2, 3), keepdims=True)
    var = jnp.mean((y - mean) ** 2, axis=(0, 2, 3), keepdims=True)
    y = (y - mean) * lax.rsqrt(var + eps)
    return y * gamma.reshape(1, -1, 1, 1) + beta.reshape(1, -1, 1, 1)


if __name__ == "__main__":
    # ConvActBatNorm(in_channels=4, out_channels=8, kernel_size=3, padding=1)
    N, Cin, H, W = 2, 4, 16, 16
    Cout, KH, KW, pad = 8, 3, 3, 1

    key = jax.random.PRNGKey(0)
    kx, kwt, kb = jax.random.split(key, 3)
    x = jax.random.normal(kx, (N, Cin, H, W), dtype=jnp.float32)

    # deterministic parameter init (PyTorch-like fan-in scaling; gamma=1, beta=0)
    fan_in = Cin * KH * KW
    bound = 1.0 / jnp.sqrt(fan_in)
    weight = jax.random.uniform(kwt, (Cout, Cin, KH, KW), jnp.float32, -bound, bound)
    bias = jax.random.uniform(kb, (Cout,), jnp.float32, -bound, bound)
    gamma = jnp.ones((Cout,), jnp.float32)
    beta = jnp.zeros((Cout,), jnp.float32)

    fn = jax.jit(functools.partial(conv_act_batchnorm, padding=pad))
    out = jax.block_until_ready(fn(x, weight, bias, gamma, beta))

    ref = reference(x, weight, bias, gamma, beta, padding=pad)
    assert out.shape == (N, Cout, H, W), out.shape
    err = float(jnp.max(jnp.abs(out - ref)))
    assert err < 1e-3, err
    print("KERNEL_OK")
</pallas_src>

<mosaic_0001>
module attributes {stable_mosaic.version = 11 : i64} {
  func.func @conv_relu_stats_kernel(%arg0: i32, %arg1: memref<2x18x128xf32, #tpu.memory_space<vmem>>, %arg2: memref<384x128xf32, #tpu.memory_space<vmem>>, %arg3: memref<1x128xf32, #tpu.memory_space<vmem>>, %arg4: memref<2x16x128xf32, #tpu.memory_space<vmem>>, %arg5: memref<2x2x128xf32, #tpu.memory_space<vmem>>) attributes {dimension_semantics = [#tpu.dimension_semantics<parallel>], iteration_bounds = array<i64: 1>, scalar_prefetch = 0 : i64, scratch_operands = 0 : i64, tpu.core_type = #tpu.core_type<tc>, window_params = [{transform_indices = @transform_0, window_bounds = array<i64: 2, 18, 128>}, {pipeline_mode = #tpu.pipeline_mode<synchronous>, transform_indices = @transform_1, window_bounds = array<i64: 384, 128>}, {pipeline_mode = #tpu.pipeline_mode<synchronous>, transform_indices = @transform_2, window_bounds = array<i64: 1, 128>}, {transform_indices = @transform_3, window_bounds = array<i64: 2, 16, 128>}, {transform_indices = @transform_4, window_bounds = array<i64: 2, 2, 128>}]} {
    %c0 = arith.constant 0 : index
    %c0_0 = arith.constant 0 : index
    %c0_1 = arith.constant 0 : index
    %0 = vector.load %arg1[%c0, %c0_0, %c0_1] : memref<2x18x128xf32, #tpu.memory_space<vmem>>, vector<2x16x128xf32>
    %1 = vector.shape_cast %0 : vector<2x16x128xf32> to vector<32x128xf32>
    %c0_2 = arith.constant 0 : index
    %c1 = arith.constant 1 : index
    %c0_3 = arith.constant 0 : index
    %2 = vector.load %arg1[%c0_2, %c1, %c0_3] : memref<2x18x128xf32, #tpu.memory_space<vmem>>, vector<2x16x128xf32>
    %3 = vector.shape_cast %2 : vector<2x16x128xf32> to vector<32x128xf32>
    %c0_4 = arith.constant 0 : index
    %c2 = arith.constant 2 : index
    %c0_5 = arith.constant 0 : index
    %4 = vector.load %arg1[%c0_4, %c2, %c0_5] : memref<2x18x128xf32, #tpu.memory_space<vmem>>, vector<2x16x128xf32>
    %5 = vector.shape_cast %4 : vector<2x16x128xf32> to vector<32x128xf32>
    %6 = tpu.concatenate %1, %3, %5 in 1 : vector<32x128xf32>, vector<32x128xf32>, vector<32x128xf32> -> vector<32x384xf32>
    %c0_6 = arith.constant 0 : index
    %c0_7 = arith.constant 0 : index
    %7 = vector.load %arg2[%c0_6, %c0_7] : memref<384x128xf32, #tpu.memory_space<vmem>>, vector<384x128xf32>
    %cst = arith.constant dense<0.000000e+00> : vector<32x128xf32>
    %8 = tpu.matmul %6, %7, %cst {dimension_numbers = #tpu.dot_dimension_numbers<[1], [0], [0], [1], [0, 0, 1, 1], [], []>} : vector<32x384xf32>, vector<384x128xf32>, vector<32x128xf32> -> vector<32x128xf32>
    %c0_8 = arith.constant 0 : index
    %c0_9 = arith.constant 0 : index
    %9 = vector.load %arg3[%c0_8, %c0_9] : memref<1x128xf32, #tpu.memory_space<vmem>>, vector<1x128xf32>
    %10 = vector.broadcast %9 : vector<1x128xf32> to vector<32x128xf32>
    %11 = arith.addf %8, %10 : vector<32x128xf32>
    %cst_10 = arith.constant 0.000000e+00 : f32
    %12 = vector.broadcast %cst_10 : f32 to vector<32x128xf32>
    %13 = arith.maximumf %11, %12 : vector<32x128xf32>
    %14 = vector.shape_cast %13 : vector<32x128xf32> to vector<2x16x128xf32>
    %c0_11 = arith.constant 0 : index
    %c0_12 = arith.constant 0 : index
    %c0_13 = arith.constant 0 : index
    %15 = vector.load %arg4[%c0_11, %c0_12, %c0_13] : memref<2x16x128xf32, #tpu.memory_space<vmem>>, vector<2x16x128xf32>
    tpu.vector_store %arg4[%c0_11, %c0_12, %c0_13], %14 {strides = array<i32>} : memref<2x16x128xf32, #tpu.memory_space<vmem>>, vector<2x16x128xf32>,
    %cst_14 = arith.constant dense<0.000000e+00> : vector<2x128xf32>
    %16 = vector.multi_reduction <add>, %14, %cst_14 [1] : vector<2x16x128xf32> to vector<2x128xf32>
    %17 = vector.shape_cast %16 : vector<2x128xf32> to vector<2x1x128xf32>
    %c0_15 = arith.constant 0 : index
    %c0_16 = arith.constant 0 : index
    %c0_17 = arith.constant 0 : index
    %18 = vector.load %arg5[%c0_15, %c0_16, %c0_17] : memref<2x2x128xf32, #tpu.memory_space<vmem>>, vector<2x1x128xf32>
    tpu.vector_store %arg5[%c0_15, %c0_16, %c0_17], %17 {strides = array<i32>} : memref<2x2x128xf32, #tpu.memory_space<vmem>>, vector<2x1x128xf32>,
    %19 = arith.mulf %14, %14 : vector<2x16x128xf32>
    %cst_18 = arith.constant dense<0.000000e+00> : vector<2x128xf32>
    %20 = vector.multi_reduction <add>, %19, %cst_18 [1] : vector<2x16x128xf32> to vector<2x128xf32>
    %21 = vector.shape_cast %20 : vector<2x128xf32> to vector<2x1x128xf32>
    %c0_19 = arith.constant 0 : index
    %c1_20 = arith.constant 1 : index
    %c0_21 = arith.constant 0 : index
    %22 = vector.load %arg5[%c0_19, %c1_20, %c0_21] : memref<2x2x128xf32, #tpu.memory_space<vmem>>, vector<2x1x128xf32>
    tpu.vector_store %arg5[%c0_19, %c1_20, %c0_21], %21 {strides = array<i32>} : memref<2x2x128xf32, #tpu.memory_space<vmem>>, vector<2x1x128xf32>,
    return
  }
  func.func @transform_0(%arg0: i32) -> (i32, i32, i32) {
    %c0_i32 = arith.constant 0 : i32
    %c0_i32_0 = arith.constant 0 : i32
    %c0_i32_1 = arith.constant 0 : i32
    return %arg0, %c0_i32, %c0_i32_0 : i32, i32, i32
  }
  func.func @transform_1(%arg0: i32) -> (i32, i32) {
    %c0_i32 = arith.constant 0 : i32
    %c0_i32_0 = arith.constant 0 : i32
    %c0_i32_1 = arith.constant 0 : i32
    return %c0_i32, %c0_i32_0 : i32, i32
  }
  func.func @transform_2(%arg0: i32) -> (i32, i32) {
    %c0_i32 = arith.constant 0 : i32
    %c0_i32_0 = arith.constant 0 : i32
    %c0_i32_1 = arith.constant 0 : i32
    return %c0_i32, %c0_i32_0 : i32, i32
  }
  func.func @transform_3(%arg0: i32) -> (i32, i32, i32) {
    %c0_i32 = arith.constant 0 : i32
    %c0_i32_0 = arith.constant 0 : i32
    %c0_i32_1 = arith.constant 0 : i32
    return %arg0, %c0_i32, %c0_i32_0 : i32, i32, i32
  }
  func.func @transform_4(%arg0: i32) -> (i32, i32, i32) {
    %c0_i32 = arith.constant 0 : i32
    %c0_i32_0 = arith.constant 0 : i32
    %c0_i32_1 = arith.constant 0 : i32
    return %arg0, %c0_i32, %c0_i32_0 : i32, i32, i32
  }
}

</mosaic_0001>

<bundles_post_ra>
// kernel: tile.18
= control target key start
LH: loop header
LB: loop body
LE: loop exit
PB: predicated region body
PF: predicated region fallthrough
CT: control target
= control target key end

     0   :  { %s28_s0 = inlined_call_operand.vmem [shape: f32[8], index: 0, kind: input, shape index: {}]   ;;  %s29_s1 = inlined_call_operand.vmem [shape: f32[16,8], index: 1, kind: output, shape index: {}]  }
   0x1   :  { %v4_v0 = vld [vmem:[%s28_s0] ss:$0 sm:$0xff] }
   0x2   :  { %5 = vst [vmem:[%s29_s1] sm:$0xff] %v4_v0  ;;  %8 = vst [vmem:[%s29_s1 + $0x8] sm:$0xff] %v4_v0 }

// kernel: conv_act_batchnorm.1
= control target key start
LH: loop header
LB: loop body
LE: loop exit
PB: predicated region body
PF: predicated region fallthrough
CT: control target
= control target key end

     0   :  { %s640_s1 = inlined_call_operand.vmem [shape: f32[384,128], index: 1, kind: input, shape index: {}]   ;;  %s641_s0 = inlined_call_operand.vmem [shape: f32[2,18,128], index: 0, kind: input, shape index: {}]   ;;  %s642_s2 = inlined_call_operand.vmem [shape: f32[1,128], index: 2, kind: input, shape index: {}]   ;;  %s643_s3 = inlined_call_operand.vmem [shape: f32[2,16,128], index: 3, kind: output, shape index: {0}]   ;;  %s644_s4 = inlined_call_operand.vmem [shape: f32[2,2,128], index: 4, kind: output, shape index: {1}]  }
   0x1   :  { %v59_v0 = vld [vmem:[%s640_s1 + $0xf8] sm:$0xff]  ;;  %v58_v2 = vld [vmem:[%s640_s1 + $0xf0] sm:$0xff]  ;;  %v57_v5 = vld [vmem:[%s640_s1 + $0xe8] sm:$0xff] }
   0x2   :  { %v43_v1 = vld [vmem:[%s640_s1 + $0x78] sm:$0xff]  ;;  %306 = vmatprep.subr.mxu0 %v59_v0  ;;  %v42_v3 = vld [vmem:[%s640_s1 + $0x70] sm:$0xff]  ;;  %v41_v7 = vld [vmem:[%s640_s1 + $0x68] sm:$0xff] }
   0x3   :  { %v75_v4 = vld [vmem:[%s640_s1 + $0x178] sm:$0xff]  ;;  %307 = vmatpush3.msra.mxu0 %v43_v1  ;;  %v74_v6 = vld [vmem:[%s640_s1 + $0x170] sm:$0xff]  ;;  %v73_v8 = vld [vmem:[%s640_s1 + $0x168] sm:$0xff] }
   0x4   :  { %370 = vmatprep.subr.mxu1 %v75_v4  ;;  %308 = vmatprep.subr.mxu0 %v58_v2  ;;  %v56_v9 = vld [vmem:[%s640_s1 + $0xe0] sm:$0xff]  ;;  %v55_v12 = vld [vmem:[%s640_s1 + $0xd8] sm:$0xff]  ;;  %v54_v15 = vld [vmem:[%s640_s1 + $0xd0] sm:$0xff] }
   0x5   :  { %371 = vmatpush3.msra.mxu1 %v75_v4  ;;  %309 = vmatpush3.msra.mxu0 %v42_v3  ;;  %v40_v10 = vld [vmem:[%s640_s1 + $0x60] sm:$0xff]  ;;  %v39_v13 = vld [vmem:[%s640_s1 + $0x58] sm:$0xff]  ;;  %v38_v16 = vld [vmem:[%s640_s1 + $0x50] sm:$0xff] }
   0x6   :  { %372 = vmatprep.subr.mxu1 %v74_v6  ;;  %310 = vmatprep.subr.mxu0 %v57_v5  ;;  %v72_v11 = vld [vmem:[%s640_s1 + $0x160] sm:$0xff]  ;;  %v71_v14 = vld [vmem:[%s640_s1 + $0x158] sm:$0xff]  ;;  %v70_v17 = vld [vmem:[%s640_s1 + $0x150] sm:$0xff] }
   0x7   :  { %373 = vmatpush3.msra.mxu1 %v74_v6  ;;  %311 = vmatpush3.msra.mxu0 %v41_v7  ;;  %v53_v18 = vld [vmem:[%s640_s1 + $0xc8] sm:$0xff]  ;;  %v52_v21 = vld [vmem:[%s640_s1 + $0xc0] sm:$0xff]  ;;  %v51_v24 = vld [vmem:[%s640_s1 + $0xb8] sm:$0xff] }
   0x8   :  { %374 = vmatprep.subr.mxu1 %v73_v8  ;;  %312 = vmatprep.subr.mxu0 %v56_v9  ;;  %v37_v19 = vld [vmem:[%s640_s1 + $0x48] sm:$0xff]  ;;  %v36_v22 = vld [vmem:[%s640_s1 + $0x40] sm:$0xff]  ;;  %v35_v25 = vld [vmem:[%s640_s1 + $0x38] sm:$0xff] }
   0x9   :  { %375 = vmatpush3.msra.mxu1 %v73_v8  ;;  %313 = vmatpush3.msra.mxu0 %v40_v10  ;;  %v69_v20 = vld [vmem:[%s640_s1 + $0x148] sm:$0xff]  ;;  %v68_v23 = vld [vmem:[%s640_s1 + $0x140] sm:$0xff]  ;;  %v67_v26 = vld [vmem:[%s640_s1 + $0x138] sm:$0xff] }
   0xa   :  { %376 = vmatprep.subr.mxu1 %v72_v11  ;;  %314 = vmatprep.subr.mxu0 %v55_v12  ;;  %v50_v27 = vld [vmem:[%s640_s1 + $0xb0] sm:$0xff]  ;;  %v49_v30 = vld [vmem:[%s640_s1 + $0xa8] sm:$0xff]  ;;  %v48_v33 = vld [vmem:[%s640_s1 + $0xa0] sm:$0xff] }
   0xb   :  { %377 = vmatpush3.msra.mxu1 %v72_v11  ;;  %315 = vmatpush3.msra.mxu0 %v39_v13  ;;  %v34_v28 = vld [vmem:[%s640_s1 + $0x30] sm:$0xff]  ;;  %v33_v31 = vld [vmem:[%s640_s1 + $0x28] sm:$0xff]  ;;  %v32_v34 = vld [vmem:[%s640_s1 + $0x20] sm:$0xff] }
   0xc   :  { %378 = vmatprep.subr.mxu1 %v71_v14  ;;  %316 = vmatprep.subr.mxu0 %v54_v15  ;;  %v66_v29 = vld [vmem:[%s640_s1 + $0x130] sm:$0xff]  ;;  %v65_v32 = vld [vmem:[%s640_s1 + $0x128] sm:$0xff]  ;;  %v64_v35 = vld [vmem:[%s640_s1 + $0x120] sm:$0xff] }
   0xd   :  { %379 = vmatpush3.msra.mxu1 %v71_v14  ;;  %317 = vmatpush3.msra.mxu0 %v38_v16  ;;  %v47_v36 = vld [vmem:[%s640_s1 + $0x98] sm:$0xff]  ;;  %v46_v39 = vld [vmem:[%s640_s1 + $0x90] sm:$0xff]  ;;  %v45_v42 = vld [vmem:[%s640_s1 + $0x88] sm:$0xff] }
   0xe   :  { %380 = vmatprep.subr.mxu1 %v70_v17  ;;  %318 = vmatprep.subr.mxu0 %v53_v18  ;;  %v31_v37 = vld [vmem:[%s640_s1 + $0x18] sm:$0xff]  ;;  %v30_v40 = vld [vmem:[%s640_s1 + $0x10] sm:$0xff]  ;;  %v20_v43 = vld [vmem:[%s641_s0 + $0x1] sm:$0xff] }
   0xf   :  { %381 = vmatpush3.msra.mxu1 %v70_v17  ;;  %319 = vmatpush3.msra.mxu0 %v37_v19  ;;  %v63_v38 = vld [vmem:[%s640_s1 + $0x118] sm:$0xff]  ;;  %v62_v41 = vld [vmem:[%s640_s1 + $0x110] sm:$0xff]  ;;  %v29_v44 = vld [vmem:[%s640_s1 + $0x8] sm:$0xff] }
  0x10   :  { %382 = vmatprep.subr.mxu1 %v69_v20  ;;  %320 = vmatprep.subr.mxu0 %v52_v21  ;;  %v44_v45 = vld [vmem:[%s640_s1 + $0x80] sm:$0xff]  ;;  %v61_v46 = vld [vmem:[%s640_s1 + $0x108] sm:$0xff]  ;;  %v18_v57 = vld [vmem:[%s641_s0 + $0x18] sm:$0xff] }
  0x11   :  { %383 = vmatpush3.msra.mxu1 %v69_v20  ;;  %321 = vmatpush3.msra.mxu0 %v36_v22  ;;  %v28_v47 = vld [vmem:[%s640_s1] sm:$0xff]  ;;  %v21_v50 = vld [vmem:[%s641_s0 + $0x9] sm:$0xff] }
  0x12   :  { %384 = vmatprep.subr.mxu1 %v68_v23  ;;  %322 = vmatprep.subr.mxu0 %v51_v24  ;;  %v16_v48 = vld [vmem:[%s641_s0] sm:$0xff]  ;;  %v25_v52 = vld [vmem:[%s641_s0 + $0xa] sm:$0xff] }
  0x13   :  { %385 = vmatpush3.msra.mxu1 %v68_v23  ;;  %323 = vmatpush3.msra.mxu0 %v35_v25  ;;  %v60_v49 = vld [vmem:[%s640_s1 + $0x100] sm:$0xff]  ;;  %v17_v53 = vld [vmem:[%s641_s0 + $0x8] sm:$0xff] }
  0x14   :  { %386 = vmatprep.subr.mxu1 %v67_v26  ;;  %324 = vmatprep.subr.mxu0 %v50_v27  ;;  %v24_v51 = vld [vmem:[%s641_s0 + $0x2] sm:$0xff]  ;;  %v26_v54 = vld [vmem:[%s641_s0 + $0x1a] sm:$0xff] }
  0x15   :  { %387 = vmatpush3.msra.mxu1 %v67_v26  ;;  %325 = vmatpush3.msra.mxu0 %v34_v28  ;;  %v22_v55 = vld [vmem:[%s641_s0 + $0x19] sm:$0xff]  ;;  %v27_v56 = vld [vmem:[%s641_s0 + $0x22] sm:$0xff] }
  0x16   :  { %388 = vmatprep.subr.mxu1 %v66_v29  ;;  %326 = vmatprep.subr.mxu0 %v49_v30  ;;  %v23_v58 = vld [vmem:[%s641_s0 + $0x21] sm:$0xff]  ;;  %v305_v62 = vld [vmem:[%s642_s2] ss:$0 sm:$0xff] }
  0x17   :  { %389 = vmatpush3.msra.mxu1 %v66_v29  ;;  %327 = vmatpush3.msra.mxu0 %v33_v31  ;;  %v19_v59 = vld [vmem:[%s641_s0 + $0x20] sm:$0xff] }
  0x18   :  { %390 = vmatprep.subr.mxu1 %v65_v32  ;;  %328 = vmatprep.subr.mxu0 %v48_v33 }
  0x19   :  { %391 = vmatpush3.msra.mxu1 %v65_v32  ;;  %329 = vmatpush3.msra.mxu0 %v32_v34 }
  0x1a   :  { %392 = vmatprep.subr.mxu1 %v64_v35  ;;  %330 = vmatprep.subr.mxu0 %v47_v36 }
  0x1b   :  { %393 = vmatpush3.msra.mxu1 %v64_v35  ;;  %331 = vmatpush3.msra.mxu0 %v31_v37 }
  0x1c   :  { %394 = vmatprep.subr.mxu1 %v63_v38  ;;  %332 = vmatprep.subr.mxu0 %v46_v39 }
  0x1d   :  { %395 = vmatpush3.msra.mxu1 %v63_v38  ;;  %333 = vmatpush3.msra.mxu0 %v30_v40 }
  0x1e   :  { %396 = vmatprep.subr.mxu1 %v62_v41  ;;  %334 = vmatprep.subr.mxu0 %v45_v42 }
  0x1f   :  { %147 = vmatprep.mubr.f32.mxu0 %v20_v43  ;;  %335 = vmatpush3.msra.mxu0 %v29_v44 }
  0x20   :  { %397 = vmatpush3.msra.mxu1 %v62_v41  ;;  %336 = vmatprep.subr.mxu0 %v44_v45 }
  0x21   :  { %398 = vmatprep.subr.mxu1 %v61_v46  ;;  %337 = vmatpush3.msra.mxu0 %v28_v47 }
  0x22   :  { %399 = vmatpush3.msra.mxu1 %v61_v46  ;;  %148 = vmatmul.mubr.f32.vlgmr.msra.gmra.mxu0 %v16_v48 }
  0x23   :  { %400 = vmatprep.subr.mxu1 %v60_v49  ;;  %152 = vmatprep.mubr.f32.mxu0 %v21_v50 }
  0x24   :  { %401 = vmatpush3.msra.mxu1 %v60_v49  ;;  %402 = vmatprep.mubr.f32.mxu1 %v24_v51 }
  0x25   :  { %403 = vmatmul.mubr.f32.vlgmr.msra.gmra.mxu1 %v25_v52 }
  0x26   :  { %153 = vmatmul.mubr.f32.gmra.mxu0 %v17_v53  ;;  %405 = vmatprep.mubr.f32.mxu1 %v26_v54 }
  0x27   :  { %157 = vmatprep.mubr.f32.mxu0 %v22_v55 }
  0x29   :  { %406 = vmatmul.mubr.f32.gmra.mxu1 %v27_v56 }
  0x2a   :  { %158 = vmatmul.mubr.f32.gmra.mxu0 %v18_v57 }
  0x2b   :  { %162 = vmatprep.mubr.f32.mxu0 %v23_v58 }
  0x2e   :  { %163 = vmatmul.mubr.f32.gmra.mxu0 %v19_v59 }
  0xe2   :  { %v338_v60 = vpop.f32.mrf.mxu0 }
  0xe4   :  { %v339_v61 = vpop.f32.mrf.mxu0 }
  0xe5   :  { %v340_v63 = vadd.f32 %v339_v61, %v338_v60  ;;  %v404_v0 = vpop.f32.mrf.mxu1 }
  0xe6   :  { %v341_v1 = vpop.f32.mrf.mxu0 }
  0xe7   :  { %v150_v2 = vadd.f32 %v340_v63, %v305_v62  ;;  %v234_v3 = vpop.f32.mrf.mxu1 }
  0xe8   :  { %v342_v4 = vpop.f32.mrf.mxu0 }
  0xe9   :  { %v343_v5 = vadd.f32 %v342_v4, %v341_v1  ;;  %v235_v6 = vadd.f32 %v234_v3, %v150_v2  ;;  %v407_v8 = vpop.f32.mrf.mxu1 }
  0xea   :  { %v344_v7 = vpop.f32.mrf.mxu0 }
  0xeb   :  { %v155_v9 = vadd.f32 %v343_v5, %v305_v62  ;;  %v253_v10 = vmax.f32 %v235_v6, 0.0  ;;  %v244_v15 = vpop.f32.mrf.mxu1 }
  0xec   :  { %v345_v11 = vpop.f32.mrf.mxu0 }
  0xed   :  { %v240_v12 = vadd.f32 %v404_v0, %v155_v9  ;;  %257 = vst [vmem:[%s643_s3] sm:$0xff] %v253_v10  ;;  %v346_v13 = vadd.f32 %v345_v11, %v344_v7  ;;  %v277_v18 = vmul.f32 %v253_v10, %v253_v10 }
  0xee   :  { %v347_v14 = vpop.f32.mrf.mxu0 }
  0xef   :  { %v254_v16 = vmax.f32 %v240_v12, 0.0  ;;  %v160_v17 = vadd.f32 %v346_v13, %v305_v62 }
  0xf0   :  { %v348_v19 = vpop.f32.mrf.mxu0 }
  0xf1   :  { %258 = vst [vmem:[%s643_s3 + $0x8] sm:$0xff] %v254_v16  ;;  %v261_v20 = vadd.f32 %v254_v16, %v253_v10  ;;  %v278_v21 = vmul.f32 %v254_v16, %v254_v16  ;;  %v349_v22 = vadd.f32 %v348_v19, %v347_v14  ;;  %v245_v23 = vadd.f32 %v244_v15, %v160_v17 }
  0xf3   :  { %v262_v24 = vrot.slane %v261_v20, 4  ;;  %v281_v25 = vadd.f32 %v278_v21, %v277_v18  ;;  %v165_v26 = vadd.f32 %v349_v22, %v305_v62  ;;  %v255_v27 = vmax.f32 %v245_v23, 0.0 }
  0xf5   :  { %v263_v28 = vadd.f32 %v262_v24, %v261_v20  ;;  %v282_v29 = vrot.slane %v281_v25, 4  ;;  %v250_v30 = vadd.f32 %v407_v8, %v165_v26  ;;  %259 = vst [vmem:[%s643_s3 + $0x10] sm:$0xff] %v255_v27  ;;  %v279_v34 = vmul.f32 %v255_v27, %v255_v27 }
  0xf7   :  { %v264_v31 = vrot.slane %v263_v28, 2  ;;  %v283_v32 = vadd.f32 %v282_v29, %v281_v25  ;;  %v256_v33 = vmax.f32 %v250_v30, 0.0 }
  0xf9   :  { %v265_v35 = vadd.f32 %v264_v31, %v263_v28  ;;  %v284_v36 = vrot.slane %v283_v32, 2  ;;  %260 = vst [vmem:[%s643_s3 + $0x18] sm:$0xff] %v256_v33  ;;  %v268_v37 = vadd.f32 %v256_v33, %v255_v27  ;;  %v280_v38 = vmul.f32 %v256_v33, %v256_v33 }
  0xfb   :  { %v266_v39 = vrot.slane %v265_v35, 1  ;;  %v285_v40 = vadd.f32 %v284_v36, %v283_v32  ;;  %v269_v41 = vrot.slane %v268_v37, 4  ;;  %v288_v42 = vadd.f32 %v280_v38, %v279_v34 }
  0xfd   :  { %v267_v43 = vadd.f32 %v266_v39, %v265_v35  ;;  %v286_v44 = vrot.slane %v285_v40, 1  ;;  %v270_v45 = vadd.f32 %v269_v41, %v268_v37  ;;  %v289_v46 = vrot.slane %v288_v42, 4 }
  0xff   :  { %275 = vst [vmem:[%s644_s4] sm:$0x1] %v267_v43  ;;  %v287_v47 = vadd.f32 %v286_v44, %v285_v40  ;;  %v271_v48 = vrot.slane %v270_v45, 2  ;;  %v290_v49 = vadd.f32 %v289_v46, %v288_v42 }
 0x101   :  { %295 = vst [vmem:[%s644_s4 + $0x1] sm:$0x1] %v287_v47  ;;  %v272_v50 = vadd.f32 %v271_v48, %v270_v45  ;;  %v291_v51 = vrot.slane %v290_v49, 2 }
 0x103   :  { %v273_v52 = vrot.slane %v272_v50, 1  ;;  %v292_v53 = vadd.f32 %v291_v51, %v290_v49 }
 0x105   :  { %v274_v54 = vadd.f32 %v273_v52, %v272_v50  ;;  %v293_v55 = vrot.slane %v292_v53, 1 }
 0x107   :  { %276 = vst [vmem:[%s644_s4 + $0x2] sm:$0x1] %v274_v54  ;;  %v294_v56 = vadd.f32 %v293_v55, %v292_v53 }
 0x109   :  { %296 = vst [vmem:[%s644_s4 + $0x3] sm:$0x1] %v294_v56 }

</bundles_post_ra>
